<compile_context>
chip_gen: v7x
topology: tpu7x:2x2x1
jax: 0.10.0
libtpu: 0.0.40
codegen_flags: <defaults>
</compile_context>

<pallas_src>
import jax
import jax.numpy as jnp
from jax.experimental import pallas as pl
from jax.experimental.pallas import tpu as pltpu


_LANES = 128           # lane-dense last dim -> unmasked vst
_MAX_TILE_ROWS = 4096  # 4096 x 128 f32 = 2 MiB per block; in+out double-buffered ~8 MiB


def _fused_conv1x1_chain_kernel(params_ref, x_ref, o_ref):
    # params_ref (SMEM): [w1, b1, w2, b2, w3, b3]
    # Fold the three affine stages on the scalar ALU, then issue ONE vector
    # mul-add over the (TILE_M, 128) block.
    w1 = params_ref[0]
    b1 = params_ref[1]
    w2 = params_ref[2]
    b2 = params_ref[3]
    w3 = params_ref[4]
    b3 = params_ref[5]
    # ((x*w1 + b1)*w2 + b2)*w3 + b3  ==  x*(w1*w2*w3) + ((b1*w2 + b2)*w3 + b3)
    w = w1 * w2 * w3
    b = (b1 * w2 + b2) * w3 + b3
    o_ref[...] = x_ref[...] * w + b


def model_forward(x_nchw, params):
    """x_nchw: (N, 1, H, W) float32; params: (6,) float32 = [w1,b1,w2,b2,w3,b3]."""
    n, c, h, w = x_nchw.shape
    total = n * c * h * w
    flat = x_nchw.reshape(total)

    # Sublane/lane-dense slab: rows a multiple of 8, 128 lanes.
    rows = pl.cdiv(total, _LANES)
    rows = ((rows + 7) // 8) * 8
    tile_rows = min(_MAX_TILE_ROWS, rows)
    # Make the row count divide evenly into tiles (pad the tail block).
    rows = ((rows + tile_rows - 1) // tile_rows) * tile_rows
    padded = rows * _LANES
    if padded != total:
        flat = jnp.pad(flat, (0, padded - total))
    x2d = flat.reshape(rows, _LANES)

    grid = (rows // tile_rows,)

    out2d = pl.pallas_call(
        _fused_conv1x1_chain_kernel,
        out_shape=jax.ShapeDtypeStruct((rows, _LANES), x2d.dtype),
        grid=grid,
        in_specs=[
            pl.BlockSpec(memory_space=pltpu.MemorySpace.SMEM),   # scalar params
            pl.BlockSpec((tile_rows, _LANES), lambda i: (i, 0)),  # input tile
        ],
        out_specs=pl.BlockSpec((tile_rows, _LANES), lambda i: (i, 0)),
        compiler_params=pltpu.CompilerParams(
            dimension_semantics=("parallel",),
        ),
    )(params, x2d)

    # Drop the lane-density padding before restoring NCHW.
    return out2d.reshape(-1)[:total].reshape(n, c, h, w)


def _reference(x, params):
    w1, b1, w2, b2, w3, b3 = [params[i] for i in range(6)]
    return ((x * w1 + b1) * w2 + b2) * w3 + b3


if __name__ == "__main__":
    key = jax.random.PRNGKey(0)
    kx, kp, kx2 = jax.random.split(key, 3)

    # Input matching the PyTorch module: x = torch.randn(1, 1, 4, 4)
    x = jax.random.normal(kx, (1, 1, 4, 4), dtype=jnp.float32)

    # Deterministic parameter init for conv1/conv2/conv3 (each a 1x1 conv,
    # i.e. one scalar weight + one scalar bias) packed as [w1,b1,w2,b2,w3,b3].
    params = jax.random.uniform(kp, (6,), dtype=jnp.float32, minval=-0.5, maxval=0.5)

    out = model_forward(x, params)
    out = jax.block_until_ready(out)
    ref = _reference(x, params)
    assert out.shape == (1, 1, 4, 4)
    # Folding the affines changes FP evaluation order -> small tolerance.
    assert jnp.allclose(out, ref, atol=1e-5, rtol=1e-5), "mismatch vs reference (small)"

    # Exercise the tiled (multi-block) production-sized path as well.
    x_big = jax.random.normal(kx2, (4, 1, 512, 512), dtype=jnp.float32)
    out_big = jax.block_until_ready(model_forward(x_big, params))
    ref_big = _reference(x_big, params)
    assert out_big.shape == x_big.shape
    assert jnp.allclose(out_big, ref_big, atol=1e-5, rtol=1e-5), "mismatch vs reference (big)"

    print("KERNEL_OK")
</pallas_src>

<mosaic_0001>
module attributes {stable_mosaic.version = 11 : i64} {
  func.func @_fused_conv1x1_chain_kernel(%arg0: i32, %arg1: memref<6xf32, #tpu.memory_space<smem>>, %arg2: memref<8x128xf32, #tpu.memory_space<vmem>>, %arg3: memref<8x128xf32, #tpu.memory_space<vmem>>) attributes {dimension_semantics = [#tpu.dimension_semantics<parallel>], iteration_bounds = array<i64: 1>, scalar_prefetch = 0 : i64, scratch_operands = 0 : i64, tpu.core_type = #tpu.core_type<tc>, window_params = [{transform_indices = @transform_0, window_bounds = array<i64: 6>}, {transform_indices = @transform_1, window_bounds = array<i64: 8, 128>}, {transform_indices = @transform_2, window_bounds = array<i64: 8, 128>}]} {
    %c0 = arith.constant 0 : index
    %0 = memref.load %arg1[%c0] : memref<6xf32, #tpu.memory_space<smem>>
    %c1 = arith.constant 1 : index
    %1 = memref.load %arg1[%c1] : memref<6xf32, #tpu.memory_space<smem>>
    %c2 = arith.constant 2 : index
    %2 = memref.load %arg1[%c2] : memref<6xf32, #tpu.memory_space<smem>>
    %c3 = arith.constant 3 : index
    %3 = memref.load %arg1[%c3] : memref<6xf32, #tpu.memory_space<smem>>
    %c4 = arith.constant 4 : index
    %4 = memref.load %arg1[%c4] : memref<6xf32, #tpu.memory_space<smem>>
    %c5 = arith.constant 5 : index
    %5 = memref.load %arg1[%c5] : memref<6xf32, #tpu.memory_space<smem>>
    %6 = arith.mulf %0, %2 : f32
    %7 = arith.mulf %6, %4 : f32
    %8 = arith.mulf %1, %2 : f32
    %9 = arith.addf %8, %3 : f32
    %10 = arith.mulf %9, %4 : f32
    %11 = arith.addf %10, %5 : f32
    %c0_0 = arith.constant 0 : index
    %c0_1 = arith.constant 0 : index
    %12 = vector.load %arg2[%c0_0, %c0_1] : memref<8x128xf32, #tpu.memory_space<vmem>>, vector<8x128xf32>
    %13 = vector.broadcast %7 : f32 to vector<8x128xf32>
    %14 = arith.mulf %12, %13 : vector<8x128xf32>
    %15 = vector.broadcast %11 : f32 to vector<8x128xf32>
    %16 = arith.addf %14, %15 : vector<8x128xf32>
    %c0_2 = arith.constant 0 : index
    %c0_3 = arith.constant 0 : index
    %17 = vector.load %arg3[%c0_2, %c0_3] : memref<8x128xf32, #tpu.memory_space<vmem>>, vector<8x128xf32>
    tpu.vector_store %arg3[%c0_2, %c0_3], %16 {strides = array<i32>} : memref<8x128xf32, #tpu.memory_space<vmem>>, vector<8x128xf32>,
    return
  }
  func.func @transform_0(%arg0: i32) -> i32 {
    %c0_i32 = arith.constant 0 : i32
    %c0_i32_0 = arith.constant 0 : i32
    return %c0_i32 : i32
  }
  func.func @transform_1(%arg0: i32) -> (i32, i32) {
    %c0_i32 = arith.constant 0 : i32
    %c0_i32_0 = arith.constant 0 : i32
    return %arg0, %c0_i32 : i32, i32
  }
  func.func @transform_2(%arg0: i32) -> (i32, i32) {
    %c0_i32 = arith.constant 0 : i32
    %c0_i32_0 = arith.constant 0 : i32
    return %arg0, %c0_i32 : i32, i32
  }
}

</mosaic_0001>

<bundles_post_ra>
// kernel: tpu_custom_call.1
= control target key start
LH: loop header
LB: loop body
LE: loop exit
PB: predicated region body
PF: predicated region fallthrough
CT: control target
= control target key end

     0   :  { %7 = vsyncpa [#allocation5], 0  ;;  %s191_s0 = inlined_call_operand.hbm [shape: f32[6], index: 0, kind: input, shape index: {}]   ;;  %s192_s1 = inlined_call_operand.hbm [shape: f32[8,128], index: 1, kind: input, shape index: {}]   ;;  %s193_s2 = inlined_call_operand.hbm [shape: f32[8,128], index: 2, kind: output, shape index: {}]  }
   0x1   :  { %8 = vsyncpa [#allocation3], 0 }
   0x2   :  { %9 = vsyncpa [#allocation4], 0  ;;  %s77_s11 = scalar_lea.hbm %s191_s0, 16 }
   0x3   :  { %p78_p0 = scmp.ne.s32.totalorder %s191_s0, %s77_s11  ;;  %p81_p1 = scmp.lt.u32.totalorder %s77_s11, %s191_s0 }
   0x5   :  { %p83_p2 = pnand %p81_p1, %p78_p0 }
   0x7   :  { %86 = shalt.err (!%p83_p2)
}
   0x8   :  { %s137_s16 = smov [#allocation2]   ;;  %s138_s19 = smov [#allocation6]  }
   0x9   :  { %17 = dma.hbm_to_smem %s191_s0, 16, %s137_s16, [#allocation5]  }
   0xa   :  { %s24_s20 = sshll.u32 %s138_s19, 4  ;;  %s87_s23 = scalar_lea.hbm %s192_s1, 128  ;;  %s25_s20 = int_to_ptr.vmem [resolvable:$true] %s24_s20 }
   0xb   :  { %p88_p3 = scmp.ne.s32.totalorder %s192_s1, %s87_s23  ;;  %p91_p4 = scmp.lt.u32.totalorder %s87_s23, %s192_s1 }
   0xd   :  { %p93_p5 = pnand %p91_p4, %p88_p3 }
   0xf   :  { %96 = shalt.err (!%p93_p5)
}
  0x10   :  { %s97_s28 = scalar_lea.vmem %s25_s20, 128  ;;  %p102_p7 = scmp.lt.s32.totalorder %s25_s20, %s25_s20 }
  0x11   :  { %p98_p6 = scmp.ne.s32.totalorder %s25_s20, %s97_s28  ;;  %p103_p8 = scmp.lt.s32.totalorder %s97_s28, %s97_s28 }
  0x13   :  { %p104_p9 = por %p103_p8, %p102_p7 }
  0x15   :  { %p105_p10 = pnand %p104_p9, %p98_p6 }
  0x17   :  { %108 = shalt.err (!%p105_p10)
}
  0x18   :  { %27 = dma.hbm_to_vmem [thread:$0]  %s192_s1, 128, %s25_s20, [#allocation3]  }
  0x19   :  { %131 = dma.done.wait [#allocation5], 16  }
  0x1a   :  { %132 = vsyncadd [#allocation5], 4294967280 }
  0x1b   :  { %133 = dma.done.wait [#allocation3], 128  }
  0x1c   :  { %134 = vsyncadd [#allocation3], 4294967168 }
  0x1d   :  { %34 = sfence }
  0x1e   :  { %s35_s30 = sld [smem:[#allocation2]]  ;;  %s69_s3 = sld [smem:[#allocation2 + $0x1]]  ;;  %v47_v0 = vld [vmem:[#allocation6] sm:$0xff] }
  0x1f   :  { %s70_s4 = sld [smem:[#allocation2 + $0x2]]  ;;  %s71_s5 = sld [smem:[#allocation2 + $0x3]] }
  0x20   :  { %s72_s6 = sld [smem:[#allocation2 + $0x4]]  ;;  %s73_s7 = sld [smem:[#allocation2 + $0x5]] }
  0x21   :  { %s139_s13 = smov [#allocation7]  }
  0x22   :  { %s59_s14 = sshll.u32 %s139_s13, 4  ;;  %s60_s14 = int_to_ptr.vmem [resolvable:$true] %s59_s14 }
  0x23   :  { %s109_s15 = scalar_lea.vmem %s60_s14, 128  ;;  %p114_p12 = scmp.lt.s32.totalorder %s60_s14, %s60_s14 }
  0x24   :  { %p110_p11 = scmp.ne.s32.totalorder %s60_s14, %s109_s15  ;;  %p115_p13 = scmp.lt.s32.totalorder %s109_s15, %s109_s15 }
  0x25   :  { %s41_s8 = smul.f32 %s70_s4, %s35_s30 }
  0x26   :  { %s43_s9 = smul.f32 %s70_s4, %s69_s3  ;;  %p116_p0 = por %p115_p13, %p114_p12 }
  0x27   :  { %s42_s10 = smul.f32 %s72_s6, %s41_s8 }
  0x28   :  { %s44_s11 = sadd.f32 %s71_s5, %s43_s9  ;;  %p117_p1 = pnand %p116_p0, %p110_p11 }
  0x29   :  { %v48_v1 = vstv %s42_s10 }
  0x2a   :  { %s45_s12 = smul.f32 %s72_s6, %s44_s11  ;;  %v49_v2 = vmul.f32 %v48_v1, %v47_v0 }
  0x2c   :  { %s46_s1 = sadd.f32 %s73_s7, %s45_s12 }
  0x2e   :  { %v50_v3 = vstv %s46_s1 }
  0x2f   :  { %v51_v4 = vadd.f32 %v50_v3, %v49_v2 }
  0x31   :  { %52 = vst [vmem:[#allocation7] sm:$0xff] %v51_v4 }
  0x32   :  { %120 = shalt.err (!%p117_p1)
}
  0x33   :  { %s121_s18 = scalar_lea.hbm %s193_s2, 128 }
  0x34   :  { %p122_p2 = scmp.ne.s32.totalorder %s193_s2, %s121_s18  ;;  %p125_p3 = scmp.lt.u32.totalorder %s121_s18, %s193_s2 }
  0x36   :  { %p127_p4 = pnand %p125_p3, %p122_p2 }
  0x38   :  { %130 = shalt.err (!%p127_p4)
}
  0x39   :  { %62 = dma.vmem_to_hbm [thread:$0]  %s60_s14, 128, %s193_s2, [#allocation4]  }
  0x3a   :  { %135 = dma.done.wait [#allocation4], 128  }
  0x3b   :  { %136 = vsyncadd [#allocation4], 4294967168 }
  0x3c   :  { %66 = vsyncpa [#allocation3], 1 }
  0x3d   :  { %67 = vsyncpa [#allocation4], 1 }
  0x3e   :  { %68 = vsyncpa [#allocation5], 1 }

</bundles_post_ra>
